<compile_context>
chip_gen: v5e
topology: v5e:2x2
jax: 0.10.0
libtpu: 0.0.40
codegen_flags: <defaults>
</compile_context>

<pallas_src>
import functools

import jax
import jax.numpy as jnp
from jax.experimental import pallas as pl
from jax.experimental.pallas import tpu as pltpu


LANE = 128                 # TPU lane width; the batch dimension lives here.
MAX_TILE_B = 256 * 1024    # ~32 MiB double-buffered per-step footprint cap.


def ann_kernel(x_ref, w1_ref, b1_ref, w2_ref, b2_ref, w3_ref, b3_ref, o_ref):
    """Feature-major 3-layer MLP on one batch tile.

    x_ref : [4, tb]          w1 : [15, 4]    b1 : [15, 1]
                             w2 : [15, 15]   b2 : [15, 1]
                             w3 : [15, 1]    b3 : [1, 1]
    o_ref : [1, tb]
    """
    x = x_ref[...]                                                    # [4, tb]

    # fc1 + ReLU : MXU matmul [15,4] @ [4,tb] -> [15,tb], f32 accumulate.
    h1 = jnp.dot(w1_ref[...], x, preferred_element_type=jnp.float32)
    h1 = jnp.maximum(h1 + b1_ref[...], 0.0)                           # [15, tb] f32

    # fc2 + ReLU : MXU matmul [15,15] @ [15,tb] -> [15,tb], f32 accumulate.
    h2 = jnp.dot(w2_ref[...], h1.astype(w2_ref.dtype),
                 preferred_element_type=jnp.float32)
    h2 = jnp.maximum(h2 + b2_ref[...], 0.0)                           # [15, tb] f32

    # fc3 (15 -> 1): sublane (XLU) reduction in f32 instead of an N=1 MXU
    # matmul (which would waste >99% of the systolic array).
    y = jnp.sum(h2 * w3_ref[...].astype(jnp.float32),
                axis=0, keepdims=True)                                # [1, tb]
    o_ref[...] = (y + b3_ref[...]).astype(o_ref.dtype)


def _resolve_tiling(B, tile_b):
    """Pick a lane-aligned batch tile: >= 2 grid steps when possible (megacore),
    <= MAX_TILE_B lanes per step (VMEM cap), and >= 128 lanes."""
    bp0 = pl.cdiv(B, LANE) * LANE
    if tile_b is None:
        n_steps = max(2, pl.cdiv(bp0, MAX_TILE_B))
        tile_b = pl.cdiv(pl.cdiv(bp0, n_steps), LANE) * LANE
    tile_b = int(tile_b)
    tile_b = max(LANE, (min(tile_b, MAX_TILE_B, bp0) // LANE) * LANE)
    bp = pl.cdiv(B, tile_b) * tile_b
    return tile_b, bp


def _ann_pallas(xt, w1, b1, w2, b2, w3, b3, *, tile_b):
    """Run the kernel on feature-major, lane-padded xt: [4, bp] -> [1, bp]."""
    _, bp = xt.shape
    grid = (bp // tile_b,)

    # Weights/biases: full-array blocks with constant index_map -> fetched once,
    # VMEM-resident across all grid steps.
    resident = lambda a: pl.BlockSpec(a.shape, lambda i: (0, 0))

    # Advisory scheduler hint (kernel-side HBM traffic only).
    flops = 2 * bp * (4 * 15 + 15 * 15 + 15)
    bytes_accessed = (
        xt.size * xt.dtype.itemsize                     # activation stream in
        + bp * 4                                        # f32 output
        + sum(int(a.size) * a.dtype.itemsize
              for a in (w1, b1, w2, b2, w3, b3)))       # params (tiny)

    # Per-step VMEM: the (4, tile_b) x block pads to 8 f32 / 16 bf16 sublanes
    # (32 B/lane either way) and the (1, tile_b) f32 output pads to 8 sublanes
    # (32 B/lane); x2 for double buffering ~= 128 B * tile_b.  Leave >= 4 MiB
    # headroom for the resident params and Mosaic internal scratch.  This is
    # <= 36 MiB, safe on v5e/v6e (128 MiB physical) and v7x (64 MiB physical),
    # and above v5e's ~16 MiB scoped default.
    vmem_limit = int(max(32 << 20, 128 * tile_b + (4 << 20)))

    return pl.pallas_call(
        ann_kernel,
        out_shape=jax.ShapeDtypeStruct((1, bp), jnp.float32),
        grid_spec=pltpu.PrefetchScalarGridSpec(
            num_scalar_prefetch=0,
            grid=grid,
            in_specs=[
                pl.BlockSpec((4, tile_b), lambda i: (0, i)),   # x tile (lane-dense)
                resident(w1), resident(b1),                    # fc1
                resident(w2), resident(b2),                    # fc2
                resident(w3), resident(b3),                    # fc3
            ],
            out_specs=pl.BlockSpec((1, tile_b), lambda i: (0, i)),
        ),
        compiler_params=pltpu.CompilerParams(
            dimension_semantics=("parallel",),   # megacore-shardable on v7x
            vmem_limit_bytes=vmem_limit,
        ),
        cost_estimate=pl.CostEstimate(
            flops=flops, transcendentals=0, bytes_accessed=bytes_accessed),
    )(xt, w1, b1, w2, b2, w3, b3)


@functools.partial(jax.jit, static_argnames=("tile_b", "compute_dtype"))
def ann_forward(x, params, *, tile_b=None, compute_dtype=jnp.float32):
    """Module-faithful entry point: x [B, 4] float32 -> [B, 1] float32.

    compute_dtype=jnp.bfloat16 streams activations/weights in bf16 (f32
    accumulation and f32 bias/ReLU/fc3 epilogue) -- recommended on v6e/v7x and
    safe on v5e; default stays f32 to match PyTorch numerics exactly.
    The jit makes the transpose+cast+pad below fuse into a single HBM copy
    written in compute_dtype.
    """
    w1, b1, w2, b2, w3, b3 = params
    B, fin = x.shape
    assert fin == 4, f"expected 4 input features, got {fin}"
    tile_b, bp = _resolve_tiling(B, tile_b)

    # One fused HBM pass: transpose + cast + lane-pad (feature-major).
    xt = jnp.pad(x.T.astype(compute_dtype), ((0, 0), (0, bp - B)))
    w1c, w2c, w3c = (w.astype(compute_dtype) for w in (w1, w2, w3))
    # Biases stay f32: the MXU result is f32, so bias+ReLU run in f32 on the
    # VPU (required on v5e, which has no bf16 VPU/EUP path).

    out_t = _ann_pallas(xt, w1c, b1, w2c, b2, w3c, b3, tile_b=tile_b)
    return out_t[:, :B].T                                   # [B, 1] float32


@functools.partial(jax.jit, static_argnames=("tile_b", "compute_dtype"))
def ann_forward_feature_major(xt, params, *, tile_b=None, compute_dtype=None):
    """Zero-copy entry point for producers with feature-major data.

    xt: [4, B] (any float dtype) -> [1, B] float32.  If B is already a
    multiple of the tile there is no wrapper-side transpose/pad/slice at all.
    """
    w1, b1, w2, b2, w3, b3 = params
    fin, B = xt.shape
    assert fin == 4, f"expected 4 input features, got {fin}"
    dt = xt.dtype if compute_dtype is None else compute_dtype
    tile_b, bp = _resolve_tiling(B, tile_b)

    xt = xt.astype(dt)
    if bp != B:
        xt = jnp.pad(xt, ((0, 0), (0, bp - B)))
    w1c, w2c, w3c = (w.astype(dt) for w in (w1, w2, w3))

    out_t = _ann_pallas(xt, w1c, b1, w2c, b2, w3c, b3, tile_b=tile_b)
    return out_t[:, :B]                                      # [1, B] float32


def init_params(key):
    """Deterministic synthetic parameters (PyTorch default-init style).

    Weights are PyTorch-native [out, in]; w3 is stored as its transpose
    [15, 1] and biases as [out, 1] so they broadcast over the lane (batch)
    axis inside the kernel.
    """
    ks = jax.random.split(key, 6)

    def uniform(k, shape, fan_in):
        bound = 1.0 / jnp.sqrt(fan_in)
        return jax.random.uniform(k, shape, jnp.float32, -bound, bound)

    w1 = uniform(ks[0], (15, 4), 4)     # fc1.weight  [out, in]
    b1 = uniform(ks[1], (15, 1), 4)     # fc1.bias    [out, 1]
    w2 = uniform(ks[2], (15, 15), 15)   # fc2.weight
    b2 = uniform(ks[3], (15, 1), 15)    # fc2.bias
    w3 = uniform(ks[4], (15, 1), 15)    # fc3.weight (stored transposed)
    b3 = uniform(ks[5], (1, 1), 15)     # fc3.bias
    return (w1, b1, w2, b2, w3, b3)


def ann_reference(x, params):
    """Plain-JAX reference identical to the PyTorch forward pass."""
    w1, b1, w2, b2, w3, b3 = params
    h = jnp.maximum(x @ w1.T + b1.T, 0.0)
    h = jnp.maximum(h @ w2.T + b2.T, 0.0)
    return h @ w3 + b3


if __name__ == "__main__":
    key = jax.random.PRNGKey(0)
    k_params, k_x1, k_x2, k_x3 = jax.random.split(key, 4)
    params = init_params(k_params)

    # Small shape implied by the module: batch=8, 4 input features.
    x_small = jax.random.normal(k_x1, (8, 4), jnp.float32)
    out_small = jax.block_until_ready(ann_forward(x_small, params))
    ref_small = ann_reference(x_small, params)
    assert out_small.shape == (8, 1)
    assert jnp.allclose(out_small, ref_small, atol=1e-5, rtol=1e-5)

    # Medium batch: 2 pipelined grid steps (megacore-shardable), padding path.
    x_med = jax.random.normal(k_x2, (2000, 4), jnp.float32)
    out_med = jax.block_until_ready(ann_forward(x_med, params))
    ref_med = ann_reference(x_med, params)
    assert out_med.shape == (2000, 1)
    assert jnp.allclose(out_med, ref_med, atol=1e-5, rtol=1e-5)

    # bf16 activation/weight stream (recommended on v6e/v7x), f32 accumulate.
    out_bf16 = jax.block_until_ready(
        ann_forward(x_med, params, compute_dtype=jnp.bfloat16))
    assert out_bf16.shape == (2000, 1)
    assert jnp.allclose(out_bf16, ref_med, atol=1.5e-1, rtol=1e-1)

    # Large batch through the zero-copy feature-major entry point: ~50K-lane
    # tiles, 2 "parallel" grid steps, no wrapper transpose/pad/slice passes.
    B_big = 100_096                      # multiple of 128 -> no padding needed
    x_big_fm = jax.random.normal(k_x3, (4, B_big), jnp.float32)
    out_big = jax.block_until_ready(ann_forward_feature_major(x_big_fm, params))
    ref_big = ann_reference(x_big_fm.T, params)
    assert out_big.shape == (1, B_big)
    assert jnp.allclose(out_big.T, ref_big, atol=1e-4, rtol=1e-4)

    print("KERNEL_OK")
</pallas_src>

<mosaic_0001>
module attributes {stable_mosaic.version = 11 : i64} {
  func.func @ann_kernel(%arg0: i32, %arg1: memref<4x128xf32, #tpu.memory_space<vmem>>, %arg2: memref<15x4xf32, #tpu.memory_space<vmem>>, %arg3: memref<15x1xf32, #tpu.memory_space<vmem>>, %arg4: memref<15x15xf32, #tpu.memory_space<vmem>>, %arg5: memref<15x1xf32, #tpu.memory_space<vmem>>, %arg6: memref<15x1xf32, #tpu.memory_space<vmem>>, %arg7: memref<1x1xf32, #tpu.memory_space<vmem>>, %arg8: memref<1x128xf32, #tpu.memory_space<vmem>>) attributes {dimension_semantics = [#tpu.dimension_semantics<parallel>], iteration_bounds = array<i64: 1>, scalar_prefetch = 0 : i64, scratch_operands = 0 : i64, tpu.core_type = #tpu.core_type<tc>, window_params = [{transform_indices = @transform_0, window_bounds = array<i64: 4, 128>}, {pipeline_mode = #tpu.pipeline_mode<synchronous>, transform_indices = @transform_1, window_bounds = array<i64: 15, 4>}, {pipeline_mode = #tpu.pipeline_mode<synchronous>, transform_indices = @transform_2, window_bounds = array<i64: 15, 1>}, {pipeline_mode = #tpu.pipeline_mode<synchronous>, transform_indices = @transform_3, window_bounds = array<i64: 15, 15>}, {pipeline_mode = #tpu.pipeline_mode<synchronous>, transform_indices = @transform_4, window_bounds = array<i64: 15, 1>}, {pipeline_mode = #tpu.pipeline_mode<synchronous>, transform_indices = @transform_5, window_bounds = array<i64: 15, 1>}, {pipeline_mode = #tpu.pipeline_mode<synchronous>, transform_indices = @transform_6, window_bounds = array<i64: 1, 1>}, {transform_indices = @transform_7, window_bounds = array<i64: 1, 128>}]} {
    %c0 = arith.constant 0 : index
    %c0_0 = arith.constant 0 : index
    %0 = vector.load %arg1[%c0, %c0_0] : memref<4x128xf32, #tpu.memory_space<vmem>>, vector<4x128xf32>
    %c0_1 = arith.constant 0 : index
    %c0_2 = arith.constant 0 : index
    %1 = vector.load %arg2[%c0_1, %c0_2] : memref<15x4xf32, #tpu.memory_space<vmem>>, vector<15x4xf32>
    %cst = arith.constant dense<0.000000e+00> : vector<15x128xf32>
    %2 = tpu.matmul %1, %0, %cst {dimension_numbers = #tpu.dot_dimension_numbers<[1], [0], [0], [1], [0, 0, 1, 1], [], []>} : vector<15x4xf32>, vector<4x128xf32>, vector<15x128xf32> -> vector<15x128xf32>
    %c0_3 = arith.constant 0 : index
    %c0_4 = arith.constant 0 : index
    %3 = vector.load %arg3[%c0_3, %c0_4] : memref<15x1xf32, #tpu.memory_space<vmem>>, vector<15x1xf32>
    %4 = vector.broadcast %3 : vector<15x1xf32> to vector<15x128xf32>
    %5 = arith.addf %2, %4 : vector<15x128xf32>
    %cst_5 = arith.constant 0.000000e+00 : f32
    %6 = vector.broadcast %cst_5 : f32 to vector<15x128xf32>
    %7 = arith.maximumf %5, %6 : vector<15x128xf32>
    %c0_6 = arith.constant 0 : index
    %c0_7 = arith.constant 0 : index
    %8 = vector.load %arg4[%c0_6, %c0_7] : memref<15x15xf32, #tpu.memory_space<vmem>>, vector<15x15xf32>
    %cst_8 = arith.constant dense<0.000000e+00> : vector<15x128xf32>
    %9 = tpu.matmul %8, %7, %cst_8 {dimension_numbers = #tpu.dot_dimension_numbers<[1], [0], [0], [1], [0, 0, 1, 1], [], []>} : vector<15x15xf32>, vector<15x128xf32>, vector<15x128xf32> -> vector<15x128xf32>
    %c0_9 = arith.constant 0 : index
    %c0_10 = arith.constant 0 : index
    %10 = vector.load %arg5[%c0_9, %c0_10] : memref<15x1xf32, #tpu.memory_space<vmem>>, vector<15x1xf32>
    %11 = vector.broadcast %10 : vector<15x1xf32> to vector<15x128xf32>
    %12 = arith.addf %9, %11 : vector<15x128xf32>
    %cst_11 = arith.constant 0.000000e+00 : f32
    %13 = vector.broadcast %cst_11 : f32 to vector<15x128xf32>
    %14 = arith.maximumf %12, %13 : vector<15x128xf32>
    %c0_12 = arith.constant 0 : index
    %c0_13 = arith.constant 0 : index
    %15 = vector.load %arg6[%c0_12, %c0_13] : memref<15x1xf32, #tpu.memory_space<vmem>>, vector<15x1xf32>
    %16 = vector.broadcast %15 : vector<15x1xf32> to vector<15x128xf32>
    %17 = arith.mulf %14, %16 : vector<15x128xf32>
    %cst_14 = arith.constant dense<0.000000e+00> : vector<128xf32>
    %18 = vector.multi_reduction <add>, %17, %cst_14 [0] : vector<15x128xf32> to vector<128xf32>
    %19 = vector.shape_cast %18 : vector<128xf32> to vector<1x128xf32>
    %c0_15 = arith.constant 0 : index
    %c0_16 = arith.constant 0 : index
    %20 = vector.load %arg7[%c0_15, %c0_16] : memref<1x1xf32, #tpu.memory_space<vmem>>, vector<1x1xf32>
    %21 = vector.broadcast %20 : vector<1x1xf32> to vector<1x128xf32>
    %22 = arith.addf %19, %21 : vector<1x128xf32>
    %c0_17 = arith.constant 0 : index
    %c0_18 = arith.constant 0 : index
    %23 = vector.load %arg8[%c0_17, %c0_18] : memref<1x128xf32, #tpu.memory_space<vmem>>, vector<1x128xf32>
    tpu.vector_store %arg8[%c0_17, %c0_18], %22 {strides = array<i32>} : memref<1x128xf32, #tpu.memory_space<vmem>>, vector<1x128xf32>,
    return
  }
  func.func @transform_0(%arg0: i32) -> (i32, i32) {
    %c0_i32 = arith.constant 0 : i32
    %c0_i32_0 = arith.constant 0 : i32
    return %c0_i32, %arg0 : i32, i32
  }
  func.func @transform_1(%arg0: i32) -> (i32, i32) {
    %c0_i32 = arith.constant 0 : i32
    %c0_i32_0 = arith.constant 0 : i32
    %c0_i32_1 = arith.constant 0 : i32
    return %c0_i32, %c0_i32_0 : i32, i32
  }
  func.func @transform_2(%arg0: i32) -> (i32, i32) {
    %c0_i32 = arith.constant 0 : i32
    %c0_i32_0 = arith.constant 0 : i32
    %c0_i32_1 = arith.constant 0 : i32
    return %c0_i32, %c0_i32_0 : i32, i32
  }
  func.func @transform_3(%arg0: i32) -> (i32, i32) {
    %c0_i32 = arith.constant 0 : i32
    %c0_i32_0 = arith.constant 0 : i32
    %c0_i32_1 = arith.constant 0 : i32
    return %c0_i32, %c0_i32_0 : i32, i32
  }
  func.func @transform_4(%arg0: i32) -> (i32, i32) {
    %c0_i32 = arith.constant 0 : i32
    %c0_i32_0 = arith.constant 0 : i32
    %c0_i32_1 = arith.constant 0 : i32
    return %c0_i32, %c0_i32_0 : i32, i32
  }
  func.func @transform_5(%arg0: i32) -> (i32, i32) {
    %c0_i32 = arith.constant 0 : i32
    %c0_i32_0 = arith.constant 0 : i32
    %c0_i32_1 = arith.constant 0 : i32
    return %c0_i32, %c0_i32_0 : i32, i32
  }
  func.func @transform_6(%arg0: i32) -> (i32, i32) {
    %c0_i32 = arith.constant 0 : i32
    %c0_i32_0 = arith.constant 0 : i32
    %c0_i32_1 = arith.constant 0 : i32
    return %c0_i32, %c0_i32_0 : i32, i32
  }
  func.func @transform_7(%arg0: i32) -> (i32, i32) {
    %c0_i32 = arith.constant 0 : i32
    %c0_i32_0 = arith.constant 0 : i32
    return %c0_i32, %arg0 : i32, i32
  }
}

</mosaic_0001>

<bundles_post_ra>
// kernel: ann_forward.1
= control target key start
LH: loop header
LB: loop body
LE: loop exit
PB: predicated region body
PF: predicated region fallthrough
CT: control target
= control target key end

     0   :  { %vm50_vm0 = vcmask 1043456   ;;  %vm43_vm1 = vcmask 31744   ;;  %v177_v0 = vmov 0   ;;  %vm100_vm2 = vcmask 1046528   ;;  %s260_s2 = inlined_call_operand.vmem [shape: f32[15,1], index: 2, kind: input, shape index: {}]   ;;  %s261_s0 = inlined_call_operand.vmem [shape: f32[4,128], index: 0, kind: input, shape index: {}]   ;;  %s262_s1 = inlined_call_operand.vmem [shape: f32[15,4], index: 1, kind: input, shape index: {}]   ;;  %s263_s6 = inlined_call_operand.<no memory space> [shape: f32[1,1], index: 6, kind: input, shape index: {}]   ;;  %s264_s4 = inlined_call_operand.vmem [shape: f32[15,1], index: 4, kind: input, shape index: {}]   ;;  %s265_s5 = inlined_call_operand.vmem [shape: f32[15,1], index: 5, kind: input, shape index: {}]   ;;  %s266_s3 = inlined_call_operand.vmem [shape: f32[15,15], index: 3, kind: input, shape index: {}]   ;;  %s267_s7 = inlined_call_operand.vmem [shape: f32[1,128], index: 7, kind: output, shape index: {}]  }
   0x1   :  { %174 = vset.pattern.permute.xlu0 %v177_v0  ;;  %v32_v1 = vld [vmem:[%s260_s2 + $0x8] sm:$0x7f]  ;;  %v28_v2 = vld [vmem:[%s261_s0] sm:$0xf]  ;;  %v12_v4 = vstv %s263_s6  ;;  %175 = vset.pattern.permute.xlu1 %v177_v0  ;;  %vm93_vm3 = vcmask 121856  }
   0x2   :  { %v29_v3 = vld [vmem:[%s262_s1] sm:$0xff]  ;;  %40 = vperm.xlu0 %174, %v32_v1   ;;  %164 = vmatpush.msk.msra.mxu0 %vm50_vm0, %v28_v2  ;;  %v30_v5 = vld [vmem:[%s262_s1 + $0x8] sm:$0x7f]  ;;  %13 = vst [vmem:[#allocation2] sm:$0x1] %v12_v4 }
   0x3   :  { %170 = vmatpush.msk.msra.mxu3 %vm50_vm0, %v28_v2  ;;  %165 = vmatmul.msk.f32.vlgmr.msra.gmra.mxu0 %vm43_vm1, %v29_v3  ;;  %v31_v6 = vld [vmem:[%s260_s2] sm:$0xff]  ;;  %v82_v8 = vld [vmem:[%s264_s4 + $0x8] sm:$0x7f] }
   0x4   :  { %166 = vmatmul.msk.f32.vlgmr.msra.gmra.mxu3 %vm43_vm1, %v30_v5  ;;  %176 = vset.pattern.permute.xlu2 %v177_v0  ;;  %v130_v9 = vld [vmem:[%s265_s5 + $0x8] sm:$0x7f]  ;;  %v81_v10 = vld [vmem:[%s264_s4] sm:$0xff] }
   0x5   :  { %90 = vperm.xlu1 %175, %v82_v8   ;;  %138 = vperm.xlu2 %176, %v130_v9   ;;  %v129_v11 = vld [vmem:[%s265_s5] sm:$0xff]  ;;  %v80_v21 = vld [vmem:[%s266_s3 + $0x8] sm:$0x7f] }
   0x6   :  { %v79_v20 = vld [vmem:[%s266_s3] sm:$0xff] }
   0x9   :  { %v151_v7 = vld [vmem:[#allocation2] sm:$0x1] }
   0xa   :  { %35 = vperm.xlu0 %174, %v31_v6  }
   0xd   :  { %85 = vperm.xlu1 %175, %v81_v10   ;;  %133 = vperm.xlu2 %176, %v129_v11  }
  0x12   :  { %154 = vperm.xlu0 %174, %v151_v7  }
  0x5f   :  { %v139_v23 = vpop.permute.xlu2 %138 }
  0x67   :  { %v134_v30 = vpop.permute.xlu2 %133 }
  0x74   :  { %v41_v12 = vpop.permute.xlu0 %40 }
  0x77   :  { %v91_v22 = vpop.permute.xlu1 %90 }
  0x7c   :  { %v36_v14 = vpop.permute.xlu0 %35 }
  0x7f   :  { %v86_v24 = vpop.permute.xlu1 %85 }
  0x80   :  { %v71_v13 = vpop.f32.mrf.mxu0 }
  0x81   :  { %v72_v16 = vadd.f32 %v71_v13, %v36_v14 }
  0x83   :  { %v77_v19 = vmax.f32 %v72_v16, 0.0 }
  0x84   :  { %v155_v40 = vpop.permute.xlu0 %154 }
  0x85   :  { %v157_v42 = vperm.slane %v155_v40, 0 }
  0x87   :  { %v74_v15 = vpop.f32.mrf.mxu3 }
  0x88   :  { %v75_v17 = vadd.f32 %v74_v15, %v41_v12 }
  0x8a   :  { %v78_v18 = vmax.f32 %v75_v17, 0.0 }
  0x8c   :  { %167 = vmatpush.msk.msra.mxu1 %vm100_vm2, %v78_v18  ;;  %171 = vmatpush.msk.msra.mxu2 %vm100_vm2, %v78_v18 }
  0x8e   :  { %119 = vmatpush.msra.mxu1 %v77_v19  ;;  %172 = vmatpush.msra.mxu2 %v77_v19 }
  0x8f   :  { %168 = vmatmul.msk.f32.vlgmr.msra.gmra.mxu1 %vm93_vm3, %v79_v20  ;;  %169 = vmatmul.msk.f32.vlgmr.msra.gmra.mxu2 %vm93_vm3, %v80_v21 }
 0x10c   :  { %v121_v25 = vpop.f32.mrf.mxu1 }
 0x10d   :  { %v122_v26 = vadd.f32 %v121_v25, %v86_v24 }
 0x10f   :  { %v127_v29 = vmax.f32 %v122_v26, 0.0 }
 0x111   :  { %v141_v33 = vmul.f32 %v134_v30, %v127_v29 }
 0x112   :  { %v124_v27 = vpop.f32.mrf.mxu2 }
 0x113   :  { %v125_v28 = vadd.f32 %v124_v27, %v91_v22 }
 0x115   :  { %v128_v31 = vmax.f32 %v125_v28, 0.0 }
 0x117   :  { %v142_v32 = vmul.f32 %v139_v23, %v128_v31 }
 0x119   :  { %v143_v34 = vsel %vm100_vm2, %v142_v32, 0.0 }
 0x11a   :  { %v144_v35 = vadd.f32 %v143_v34, %v141_v33 }
 0x11c   :  { %v145_v36 = vrot.slane %v144_v35, 4 }
 0x11e   :  { %v146_v37 = vadd.f32 %v145_v36, %v144_v35 }
 0x120   :  { %v147_v38 = vrot.slane %v146_v37, 2 }
 0x122   :  { %v148_v39 = vadd.f32 %v147_v38, %v146_v37 }
 0x124   :  { %v149_v41 = vrot.slane %v148_v39, 1 }
 0x126   :  { %v150_v43 = vadd.f32 %v149_v41, %v148_v39 }
 0x128   :  { %v158_v44 = vadd.f32 %v157_v42, %v150_v43 }
 0x12a   :  { %159 = vst [vmem:[%s267_s7] sm:$0x1] %v158_v44 }

</bundles_post_ra>
